<compile_context>
chip_gen: v6e
topology: v6e:2x2x1
jax: 0.10.0
libtpu: 0.0.40
codegen_flags: <defaults>
</compile_context>

<pallas_src>
import functools
import numpy as np
import jax
import jax.numpy as jnp
from jax import lax
from jax.experimental import pallas as pl
from jax.experimental.pallas import tpu as pltpu


# ------------------------------- Pallas kernel -------------------------------

def _sigmoid(z):
    # exp(-z) -> inf for very negative z gives recip -> 0, matching sigmoid.
    return pl.reciprocal(1.0 + jnp.exp(-z), approx=True)


def _piha_fused_kernel(patches_ref, asc_ref, w12_ref, b12_ref,
                       se1w1t_ref, se1w2_ref, wpg_ref, bpg_ref,
                       se2w1t_ref, se2w2_ref, o_ref, *, part_num, cg, thresh):
    C = part_num * cg
    inv_hw = 1.0 / float(patches_ref.shape[-1])

    # conv_S1 + conv_S2 fused: one matmul with lane-dense N = H*W.
    s = jnp.dot(w12_ref[...], patches_ref[0],
                preferred_element_type=jnp.float32) + b12_ref[...]      # (2C, HW)
    X1 = s[:C]                                                          # (C, HW)
    X2 = s[C:]                                                          # (C, HW)

    # SE_Block (se_S1): lane reduction + two tiny FCs as broadcast+reduce.
    mean = jnp.sum(X1, axis=-1, keepdims=True) * inv_hw                 # (C, 1)
    y1 = jnp.maximum(
        jnp.sum(se1w1t_ref[...] * mean, axis=0, keepdims=True), 0.0)    # (1, C//2)
    z1 = jnp.sum(se1w2_ref[...] * y1, axis=-1, keepdims=True)           # (C, 1)
    out1 = X1 * _sigmoid(z1)

    # phy_group_conv as one block-diagonal matmul, then fuse with X2.
    asc_conv = jnp.dot(wpg_ref[...], asc_ref[0],
                       preferred_element_type=jnp.float32) + bpg_ref[...]   # (C, HW)
    fuse = asc_conv * X2

    # Selective_AvgPool2d: lane-axis reductions.
    msk = (jnp.abs(fuse) > thresh).astype(jnp.float32)
    num = jnp.sum(fuse * msk, axis=-1, keepdims=True)                   # (C, 1)
    cnt = jnp.sum(msk, axis=-1, keepdims=True)                          # (C, 1)
    v = num * pl.reciprocal(cnt + 1e-6, approx=True)                    # (C, 1)

    # se_S2 per part (tiny), then softmax over the part dimension.
    se_cols = []
    for g in range(part_num):
        v_g = v[g * cg:(g + 1) * cg]                                    # (cg, 1)
        h1 = jnp.maximum(
            jnp.sum(se2w1t_ref[...] * v_g, axis=0, keepdims=True), 0.0)  # (1, cg_r)
        z_g = jnp.sum(se2w2_ref[...] * h1, axis=-1, keepdims=True)       # (cg, 1)
        se_cols.append(_sigmoid(z_g))

    m = se_cols[0]
    for g in range(1, part_num):
        m = jnp.maximum(m, se_cols[g])
    exps = [jnp.exp(c - m) for c in se_cols]
    denom = exps[0]
    for g in range(1, part_num):
        denom = denom + exps[g]
    inv_denom = pl.reciprocal(denom, approx=True)

    # output = out1 + fuse * attn   (stored per group, lanes fully dense)
    for g in range(part_num):
        attn_g = exps[g] * inv_denom                                    # (cg, 1)
        gs = g * cg
        o_ref[0, g] = out1[gs:gs + cg] + fuse[gs:gs + cg] * attn_g


# --------------------------------- wrapper -----------------------------------

def piha_forward(x, asc, params, part_num, down_rate, thresh=0.05):
    """NCHW in, NCHW out (PyTorch semantics) — single fused Pallas kernel."""
    B, C, H, W = x.shape
    cg = C // part_num
    K = down_rate + 1
    HW = H * W

    # Shared im2col for conv_S1/conv_S2 (channels-first, HW flattened on lanes).
    # TODO(synk): move this tap construction into the kernel (halo loads).
    xp = jnp.pad(x, ((0, 0), (0, 0), (1, 1), (1, 1)))
    taps = [xp[:, :, kh:kh + H, kw:kw + W] for kh in range(3) for kw in range(3)]
    patches = jnp.stack(taps, axis=1).reshape(B, 9 * C, HW)             # (B, 9C, HW)

    # conv_S1 / conv_S2 weights fused into one (2C, 9C) matrix (cols = (kh,kw,ci)).
    w_cat = jnp.concatenate([params['w_s1'], params['w_s2']], axis=0)   # (2C, C, 3, 3)
    w12 = jnp.transpose(w_cat, (0, 2, 3, 1)).reshape(2 * C, 9 * C)
    b12 = jnp.concatenate([params['b_s1'], params['b_s2']]).reshape(2 * C, 1)

    # Grouped phy conv: strided taps + block-diagonal weight -> one wide matmul.
    ascp = jnp.pad(asc, ((0, 0), (0, 0), (1, 1), (1, 1)))
    span_h = (H - 1) * down_rate + 1
    span_w = (W - 1) * down_rate + 1
    ataps = [ascp[:, :, kh:kh + span_h:down_rate, kw:kw + span_w:down_rate]
             for kh in range(K) for kw in range(K)]
    asc_taps = jnp.stack(ataps, axis=2).reshape(B, part_num * K * K, HW)

    w_pg = params['w_pg'][:, 0].reshape(part_num, cg, K * K)
    w_bd = jax.scipy.linalg.block_diag(*[w_pg[g] for g in range(part_num)])  # (C, P*K*K)
    b_pg = params['b_pg'].reshape(C, 1)

    se1w1t = params['se1_w1'].T                      # (C, C//2)
    se1w2 = params['se1_w2']                         # (C, C//2)
    se2w1t = params['se2_w1'][:, :, 0, 0].T          # (cg, cg_r)
    se2w2 = params['se2_w2'][:, :, 0, 0]             # (cg, cg_r)
    cr1 = se1w2.shape[1]
    cg_r = se2w2.shape[1]

    kern = functools.partial(_piha_fused_kernel,
                             part_num=part_num, cg=cg, thresh=thresh)
    out = pl.pallas_call(
        kern,
        out_shape=jax.ShapeDtypeStruct((B, part_num, cg, HW), jnp.float32),
        grid=(B,),
        in_specs=[
            pl.BlockSpec((1, 9 * C, HW), lambda b: (b, 0, 0)),
            pl.BlockSpec((1, part_num * K * K, HW), lambda b: (b, 0, 0)),
            pl.BlockSpec((2 * C, 9 * C), lambda b: (0, 0)),
            pl.BlockSpec((2 * C, 1), lambda b: (0, 0)),
            pl.BlockSpec((C, cr1), lambda b: (0, 0)),
            pl.BlockSpec((C, cr1), lambda b: (0, 0)),
            pl.BlockSpec((C, part_num * K * K), lambda b: (0, 0)),
            pl.BlockSpec((C, 1), lambda b: (0, 0)),
            pl.BlockSpec((cg, cg_r), lambda b: (0, 0)),
            pl.BlockSpec((cg, cg_r), lambda b: (0, 0)),
        ],
        out_specs=pl.BlockSpec((1, part_num, cg, HW), lambda b: (b, 0, 0, 0)),
        compiler_params=pltpu.CompilerParams(dimension_semantics=("parallel",)),
    )(patches, asc_taps, w12, b12, se1w1t, se1w2, w_bd, b_pg, se2w1t, se2w2)

    # (B, P, cg, H*W) is contiguous-equal to (B, C, H, W): free reshape, no transpose.
    return out.reshape(B, C, H, W)


# ----------------------------- pure-JAX reference -----------------------------

def piha_reference(x, asc, params, part_num, down_rate):
    B, C, H, W = x.shape
    cg = C // part_num
    dn = ('NCHW', 'OIHW', 'NCHW')
    hp = dict(dimension_numbers=dn, precision=lax.Precision.HIGHEST)
    X1 = lax.conv_general_dilated(x, params['w_s1'], (1, 1), ((1, 1), (1, 1)), **hp) \
        + params['b_s1'][None, :, None, None]
    X2 = lax.conv_general_dilated(x, params['w_s2'], (1, 1), ((1, 1), (1, 1)), **hp) \
        + params['b_s2'][None, :, None, None]
    m = jnp.mean(X1, axis=(2, 3))
    y1 = jax.nn.relu(m @ params['se1_w1'].T)
    y2 = jax.nn.sigmoid(y1 @ params['se1_w2'].T)
    out1 = X1 * y2[:, :, None, None]
    asc_c = lax.conv_general_dilated(asc, params['w_pg'], (down_rate, down_rate),
                                     ((1, 1), (1, 1)),
                                     feature_group_count=part_num, **hp) \
        + params['b_pg'][None, :, None, None]
    fuse_ = asc_c * X2
    fuse = fuse_.reshape(B, part_num, cg, H, W)
    msk = (jnp.abs(fuse) > 0.05).astype(x.dtype)
    v = (fuse * msk).sum(axis=-1).sum(axis=-1) / (msk.sum(axis=-1).sum(axis=-1) + 1e-6)
    w1 = params['se2_w1'][:, :, 0, 0]
    w2 = params['se2_w2'][:, :, 0, 0]
    h1 = jax.nn.relu(jnp.einsum('bpc,rc->bpr', v, w1))
    se = jax.nn.sigmoid(jnp.einsum('bpr,cr->bpc', h1, w2))
    attn = jax.nn.softmax(se, axis=1)
    out2 = fuse_ * attn.reshape(B, C, 1, 1)
    return out1 + out2


# ------------------------------------ main ------------------------------------

if __name__ == "__main__":
    B, C, H, W = 2, 4, 16, 16
    part_num, down_rate, reduction = 2, 2, 2
    se1_red = 2                       # SE_Block(in_channel, 2) in PIHA.__init__
    cg = C // part_num
    cg_r = cg // reduction
    K = down_rate + 1

    key = jax.random.PRNGKey(0)
    ks = jax.random.split(key, 10)
    params = {
        'w_s1': 0.15 * jax.random.normal(ks[0], (C, C, 3, 3), jnp.float32),
        'b_s1': 0.05 * jax.random.normal(ks[1], (C,), jnp.float32),
        'w_s2': 0.15 * jax.random.normal(ks[2], (C, C, 3, 3), jnp.float32),
        'b_s2': 0.05 * jax.random.normal(ks[3], (C,), jnp.float32),
        'w_pg': 0.15 * jax.random.normal(ks[4], (C, 1, K, K), jnp.float32),
        'b_pg': 0.05 * jax.random.normal(ks[5], (C,), jnp.float32),
        'se1_w1': 0.3 * jax.random.normal(ks[6], (C // se1_red, C), jnp.float32),
        'se1_w2': 0.3 * jax.random.normal(ks[7], (C, C // se1_red), jnp.float32),
        'se2_w1': 0.3 * jax.random.normal(ks[8], (cg_r, cg, 1, 1), jnp.float32),
        'se2_w2': 0.3 * jax.random.normal(ks[9], (cg, cg_r, 1, 1), jnp.float32),
    }
    kx, ka = jax.random.split(jax.random.PRNGKey(1))
    x = jax.random.normal(kx, (B, C, H, W), jnp.float32)
    asc = jax.random.normal(
        ka, (B, part_num, H * down_rate, W * down_rate), jnp.float32)

    piha_jit = jax.jit(piha_forward, static_argnums=(3, 4))
    out = piha_jit(x, asc, params, part_num, down_rate)
    out = jax.block_until_ready(out)

    ref = piha_reference(x, asc, params, part_num, down_rate)
    assert out.shape == (B, C, H, W)
    # Tolerance widened deliberately: kernel uses MXU default precision and the
    # EUP approximate reciprocal (sigmoid / selective-pool / softmax divides),
    # while the reference runs exact f32 with HIGHEST matmul precision.
    err = float(np.max(np.abs(np.asarray(out) - np.asarray(ref))))
    assert np.allclose(np.asarray(out), np.asarray(ref), rtol=5e-3, atol=5e-3), err
    print("KERNEL_OK")
</pallas_src>

<mosaic_0001>
module attributes {stable_mosaic.version = 11 : i64} {
  func.func @_piha_fused_kernel(%arg0: i32, %arg1: memref<1x36x256xf32, #tpu.memory_space<vmem>>, %arg2: memref<1x18x256xf32, #tpu.memory_space<vmem>>, %arg3: memref<8x36xf32, #tpu.memory_space<vmem>>, %arg4: memref<8x1xf32, #tpu.memory_space<vmem>>, %arg5: memref<4x2xf32, #tpu.memory_space<vmem>>, %arg6: memref<4x2xf32, #tpu.memory_space<vmem>>, %arg7: memref<4x18xf32, #tpu.memory_space<vmem>>, %arg8: memref<4x1xf32, #tpu.memory_space<vmem>>, %arg9: memref<2x1xf32, #tpu.memory_space<vmem>>, %arg10: memref<2x1xf32, #tpu.memory_space<vmem>>, %arg11: memref<1x2x2x256xf32, #tpu.memory_space<vmem>>) attributes {dimension_semantics = [#tpu.dimension_semantics<parallel>], iteration_bounds = array<i64: 2>, scalar_prefetch = 0 : i64, scratch_operands = 0 : i64, tpu.core_type = #tpu.core_type<tc>, window_params = [{transform_indices = @transform_0, window_bounds = array<i64: 1, 36, 256>}, {transform_indices = @transform_1, window_bounds = array<i64: 1, 18, 256>}, {pipeline_mode = #tpu.pipeline_mode<synchronous>, transform_indices = @transform_2, window_bounds = array<i64: 8, 36>}, {pipeline_mode = #tpu.pipeline_mode<synchronous>, transform_indices = @transform_3, window_bounds = array<i64: 8, 1>}, {pipeline_mode = #tpu.pipeline_mode<synchronous>, transform_indices = @transform_4, window_bounds = array<i64: 4, 2>}, {pipeline_mode = #tpu.pipeline_mode<synchronous>, transform_indices = @transform_5, window_bounds = array<i64: 4, 2>}, {pipeline_mode = #tpu.pipeline_mode<synchronous>, transform_indices = @transform_6, window_bounds = array<i64: 4, 18>}, {pipeline_mode = #tpu.pipeline_mode<synchronous>, transform_indices = @transform_7, window_bounds = array<i64: 4, 1>}, {pipeline_mode = #tpu.pipeline_mode<synchronous>, transform_indices = @transform_8, window_bounds = array<i64: 2, 1>}, {pipeline_mode = #tpu.pipeline_mode<synchronous>, transform_indices = @transform_9, window_bounds = array<i64: 2, 1>}, {transform_indices = @transform_10, window_bounds = array<i64: 1, 2, 2, 256>}]} {
    %c0 = arith.constant 0 : index
    %c0_0 = arith.constant 0 : index
    %0 = vector.load %arg3[%c0, %c0_0] : memref<8x36xf32, #tpu.memory_space<vmem>>, vector<8x36xf32>
    %c0_1 = arith.constant 0 : index
    %c0_2 = arith.constant 0 : index
    %c0_3 = arith.constant 0 : index
    %1 = vector.load %arg1[%c0_1, %c0_2, %c0_3] : memref<1x36x256xf32, #tpu.memory_space<vmem>>, vector<1x36x256xf32>
    %2 = vector.shape_cast %1 : vector<1x36x256xf32> to vector<36x256xf32>
    %cst = arith.constant dense<0.000000e+00> : vector<8x256xf32>
    %3 = tpu.matmul %0, %2, %cst {dimension_numbers = #tpu.dot_dimension_numbers<[1], [0], [0], [1], [0, 0, 1, 1], [], []>} : vector<8x36xf32>, vector<36x256xf32>, vector<8x256xf32> -> vector<8x256xf32>
    %c0_4 = arith.constant 0 : index
    %c0_5 = arith.constant 0 : index
    %4 = vector.load %arg4[%c0_4, %c0_5] : memref<8x1xf32, #tpu.memory_space<vmem>>, vector<8x1xf32>
    %5 = vector.broadcast %4 : vector<8x1xf32> to vector<8x256xf32>
    %6 = arith.addf %3, %5 : vector<8x256xf32>
    %7 = vector.extract_strided_slice %6 {offsets = [0, 0], sizes = [4, 256], strides = [1, 1]} : vector<8x256xf32> to vector<4x256xf32>
    %8 = vector.extract_strided_slice %6 {offsets = [4, 0], sizes = [4, 256], strides = [1, 1]} : vector<8x256xf32> to vector<4x256xf32>
    %cst_6 = arith.constant dense<0.000000e+00> : vector<4xf32>
    %9 = vector.multi_reduction <add>, %7, %cst_6 [1] : vector<4x256xf32> to vector<4xf32>
    %10 = vector.shape_cast %9 : vector<4xf32> to vector<4x1xf32>
    %cst_7 = arith.constant 3.906250e-03 : f32
    %11 = vector.broadcast %cst_7 : f32 to vector<4x1xf32>
    %12 = arith.mulf %10, %11 : vector<4x1xf32>
    %c0_8 = arith.constant 0 : index
    %c0_9 = arith.constant 0 : index
    %13 = vector.load %arg5[%c0_8, %c0_9] : memref<4x2xf32, #tpu.memory_space<vmem>>, vector<4x2xf32>
    %14 = vector.broadcast %12 : vector<4x1xf32> to vector<4x2xf32>
    %15 = arith.mulf %13, %14 : vector<4x2xf32>
    %cst_10 = arith.constant dense<0.000000e+00> : vector<2xf32>
    %16 = vector.multi_reduction <add>, %15, %cst_10 [0] : vector<4x2xf32> to vector<2xf32>
    %17 = vector.shape_cast %16 : vector<2xf32> to vector<1x2xf32>
    %cst_11 = arith.constant 0.000000e+00 : f32
    %18 = vector.broadcast %cst_11 : f32 to vector<1x2xf32>
    %19 = arith.maximumf %17, %18 : vector<1x2xf32>
    %c0_12 = arith.constant 0 : index
    %c0_13 = arith.constant 0 : index
    %20 = vector.load %arg6[%c0_12, %c0_13] : memref<4x2xf32, #tpu.memory_space<vmem>>, vector<4x2xf32>
    %21 = vector.broadcast %19 : vector<1x2xf32> to vector<4x2xf32>
    %22 = arith.mulf %20, %21 : vector<4x2xf32>
    %cst_14 = arith.constant dense<0.000000e+00> : vector<4xf32>
    %23 = vector.multi_reduction <add>, %22, %cst_14 [1] : vector<4x2xf32> to vector<4xf32>
    %24 = vector.shape_cast %23 : vector<4xf32> to vector<4x1xf32>
    %cst_15 = arith.constant 0.000000e+00 : f32
    %25 = vector.broadcast %cst_15 : f32 to vector<4x1xf32>
    %26 = arith.subf %25, %24 : vector<4x1xf32>
    %27 = math.exp %26 : vector<4x1xf32>
    %cst_16 = arith.constant 1.000000e+00 : f32
    %28 = vector.broadcast %cst_16 : f32 to vector<4x1xf32>
    %29 = arith.addf %28, %27 : vector<4x1xf32>
    %30 = tpu.reciprocal %29 {approx = true} : vector<4x1xf32> -> vector<4x1xf32>
    %31 = vector.broadcast %30 : vector<4x1xf32> to vector<4x256xf32>
    %32 = arith.mulf %7, %31 : vector<4x256xf32>
    %c0_17 = arith.constant 0 : index
    %c0_18 = arith.constant 0 : index
    %33 = vector.load %arg7[%c0_17, %c0_18] : memref<4x18xf32, #tpu.memory_space<vmem>>, vector<4x18xf32>
    %c0_19 = arith.constant 0 : index
    %c0_20 = arith.constant 0 : index
    %c0_21 = arith.constant 0 : index
    %34 = vector.load %arg2[%c0_19, %c0_20, %c0_21] : memref<1x18x256xf32, #tpu.memory_space<vmem>>, vector<1x18x256xf32>
    %35 = vector.shape_cast %34 : vector<1x18x256xf32> to vector<18x256xf32>
    %cst_22 = arith.constant dense<0.000000e+00> : vector<4x256xf32>
    %36 = tpu.matmul %33, %35, %cst_22 {dimension_numbers = #tpu.dot_dimension_numbers<[1], [0], [0], [1], [0, 0, 1, 1], [], []>} : vector<4x18xf32>, vector<18x256xf32>, vector<4x256xf32> -> vector<4x256xf32>
    %c0_23 = arith.constant 0 : index
    %c0_24 = arith.constant 0 : index
    %37 = vector.load %arg8[%c0_23, %c0_24] : memref<4x1xf32, #tpu.memory_space<vmem>>, vector<4x1xf32>
    %38 = vector.broadcast %37 : vector<4x1xf32> to vector<4x256xf32>
    %39 = arith.addf %36, %38 : vector<4x256xf32>
    %40 = arith.mulf %39, %8 : vector<4x256xf32>
    %41 = math.absf %40 : vector<4x256xf32>
    %cst_25 = arith.constant 5.000000e-02 : f32
    %42 = vector.broadcast %cst_25 : f32 to vector<4x256xf32>
    %43 = arith.cmpf ogt, %41, %42 : vector<4x256xf32>
    %44 = arith.extui %43 : vector<4x256xi1> to vector<4x256xi32>
    %45 = arith.sitofp %44 : vector<4x256xi32> to vector<4x256xf32>
    %46 = arith.mulf %40, %45 : vector<4x256xf32>
    %cst_26 = arith.constant dense<0.000000e+00> : vector<4xf32>
    %47 = vector.multi_reduction <add>, %46, %cst_26 [1] : vector<4x256xf32> to vector<4xf32>
    %48 = vector.shape_cast %47 : vector<4xf32> to vector<4x1xf32>
    %cst_27 = arith.constant dense<0.000000e+00> : vector<4xf32>
    %49 = vector.multi_reduction <add>, %45, %cst_27 [1] : vector<4x256xf32> to vector<4xf32>
    %50 = vector.shape_cast %49 : vector<4xf32> to vector<4x1xf32>
    %cst_28 = arith.constant 9.99999997E-7 : f32
    %51 = vector.broadcast %cst_28 : f32 to vector<4x1xf32>
    %52 = arith.addf %50, %51 : vector<4x1xf32>
    %53 = tpu.reciprocal %52 {approx = true} : vector<4x1xf32> -> vector<4x1xf32>
    %54 = arith.mulf %48, %53 : vector<4x1xf32>
    %55 = vector.extract_strided_slice %54 {offsets = [0, 0], sizes = [2, 1], strides = [1, 1]} : vector<4x1xf32> to vector<2x1xf32>
    %c0_29 = arith.constant 0 : index
    %c0_30 = arith.constant 0 : index
    %56 = vector.load %arg9[%c0_29, %c0_30] : memref<2x1xf32, #tpu.memory_space<vmem>>, vector<2x1xf32>
    %57 = arith.mulf %56, %55 : vector<2x1xf32>
    %cst_31 = arith.constant dense<0.000000e+00> : vector<1xf32>
    %58 = vector.multi_reduction <add>, %57, %cst_31 [0] : vector<2x1xf32> to vector<1xf32>
    %59 = vector.shape_cast %58 : vector<1xf32> to vector<1x1xf32>
    %cst_32 = arith.constant 0.000000e+00 : f32
    %60 = vector.broadcast %cst_32 : f32 to vector<1x1xf32>
    %61 = arith.maximumf %59, %60 : vector<1x1xf32>
    %c0_33 = arith.constant 0 : index
    %c0_34 = arith.constant 0 : index
    %62 = vector.load %arg10[%c0_33, %c0_34] : memref<2x1xf32, #tpu.memory_space<vmem>>, vector<2x1xf32>
    %63 = vector.broadcast %61 : vector<1x1xf32> to vector<2x1xf32>
    %64 = arith.mulf %62, %63 : vector<2x1xf32>
    %cst_35 = arith.constant dense<0.000000e+00> : vector<2xf32>
    %65 = vector.multi_reduction <add>, %64, %cst_35 [1] : vector<2x1xf32> to vector<2xf32>
    %66 = vector.shape_cast %65 : vector<2xf32> to vector<2x1xf32>
    %cst_36 = arith.constant 0.000000e+00 : f32
    %67 = vector.broadcast %cst_36 : f32 to vector<2x1xf32>
    %68 = arith.subf %67, %66 : vector<2x1xf32>
    %69 = math.exp %68 : vector<2x1xf32>
    %cst_37 = arith.constant 1.000000e+00 : f32
    %70 = vector.broadcast %cst_37 : f32 to vector<2x1xf32>
    %71 = arith.addf %70, %69 : vector<2x1xf32>
    %72 = tpu.reciprocal %71 {approx = true} : vector<2x1xf32> -> vector<2x1xf32>
    %73 = vector.extract_strided_slice %54 {offsets = [2, 0], sizes = [2, 1], strides = [1, 1]} : vector<4x1xf32> to vector<2x1xf32>
    %c0_38 = arith.constant 0 : index
    %c0_39 = arith.constant 0 : index
    %74 = vector.load %arg9[%c0_38, %c0_39] : memref<2x1xf32, #tpu.memory_space<vmem>>, vector<2x1xf32>
    %75 = arith.mulf %74, %73 : vector<2x1xf32>
    %cst_40 = arith.constant dense<0.000000e+00> : vector<1xf32>
    %76 = vector.multi_reduction <add>, %75, %cst_40 [0] : vector<2x1xf32> to vector<1xf32>
    %77 = vector.shape_cast %76 : vector<1xf32> to vector<1x1xf32>
    %cst_41 = arith.constant 0.000000e+00 : f32
    %78 = vector.broadcast %cst_41 : f32 to vector<1x1xf32>
    %79 = arith.maximumf %77, %78 : vector<1x1xf32>
    %c0_42 = arith.constant 0 : index
    %c0_43 = arith.constant 0 : index
    %80 = vector.load %arg10[%c0_42, %c0_43] : memref<2x1xf32, #tpu.memory_space<vmem>>, vector<2x1xf32>
    %81 = vector.broadcast %79 : vector<1x1xf32> to vector<2x1xf32>
    %82 = arith.mulf %80, %81 : vector<2x1xf32>
    %cst_44 = arith.constant dense<0.000000e+00> : vector<2xf32>
    %83 = vector.multi_reduction <add>, %82, %cst_44 [1] : vector<2x1xf32> to vector<2xf32>
    %84 = vector.shape_cast %83 : vector<2xf32> to vector<2x1xf32>
    %cst_45 = arith.constant 0.000000e+00 : f32
    %85 = vector.broadcast %cst_45 : f32 to vector<2x1xf32>
    %86 = arith.subf %85, %84 : vector<2x1xf32>
    %87 = math.exp %86 : vector<2x1xf32>
    %cst_46 = arith.constant 1.000000e+00 : f32
    %88 = vector.broadcast %cst_46 : f32 to vector<2x1xf32>
    %89 = arith.addf %88, %87 : vector<2x1xf32>
    %90 = tpu.reciprocal %89 {approx = true} : vector<2x1xf32> -> vector<2x1xf32>
    %91 = arith.maximumf %72, %90 : vector<2x1xf32>
    %92 = arith.subf %72, %91 : vector<2x1xf32>
    %93 = math.exp %92 : vector<2x1xf32>
    %94 = arith.subf %90, %91 : vector<2x1xf32>
    %95 = math.exp %94 : vector<2x1xf32>
    %96 = arith.addf %93, %95 : vector<2x1xf32>
    %97 = tpu.reciprocal %96 {approx = true} : vector<2x1xf32> -> vector<2x1xf32>
    %98 = arith.mulf %93, %97 : vector<2x1xf32>
    %99 = vector.extract_strided_slice %32 {offsets = [0, 0], sizes = [2, 256], strides = [1, 1]} : vector<4x256xf32> to vector<2x256xf32>
    %100 = vector.extract_strided_slice %40 {offsets = [0, 0], sizes = [2, 256], strides = [1, 1]} : vector<4x256xf32> to vector<2x256xf32>
    %101 = vector.broadcast %98 : vector<2x1xf32> to vector<2x256xf32>
    %102 = arith.mulf %100, %101 : vector<2x256xf32>
    %103 = arith.addf %99, %102 : vector<2x256xf32>
    %c0_47 = arith.constant 0 : index
    %c0_48 = arith.constant 0 : index
    %c0_49 = arith.constant 0 : index
    %c0_50 = arith.constant 0 : index
    %104 = vector.load %arg11[%c0_47, %c0_48, %c0_49, %c0_50] : memref<1x2x2x256xf32, #tpu.memory_space<vmem>>, vector<1x1x2x256xf32>
    %105 = vector.shape_cast %104 : vector<1x1x2x256xf32> to vector<2x256xf32>
    %106 = vector.shape_cast %103 : vector<2x256xf32> to vector<1x1x2x256xf32>
    tpu.vector_store %arg11[%c0_47, %c0_48, %c0_49, %c0_50], %106 {strides = array<i32>} : memref<1x2x2x256xf32, #tpu.memory_space<vmem>>, vector<1x1x2x256xf32>,
    %107 = arith.mulf %95, %97 : vector<2x1xf32>
    %108 = vector.extract_strided_slice %32 {offsets = [2, 0], sizes = [2, 256], strides = [1, 1]} : vector<4x256xf32> to vector<2x256xf32>
    %109 = vector.extract_strided_slice %40 {offsets = [2, 0], sizes = [2, 256], strides = [1, 1]} : vector<4x256xf32> to vector<2x256xf32>
    %110 = vector.broadcast %107 : vector<2x1xf32> to vector<2x256xf32>
    %111 = arith.mulf %109, %110 : vector<2x256xf32>
    %112 = arith.addf %108, %111 : vector<2x256xf32>
    %c0_51 = arith.constant 0 : index
    %c1 = arith.constant 1 : index
    %c0_52 = arith.constant 0 : index
    %c0_53 = arith.constant 0 : index
    %113 = vector.load %arg11[%c0_51, %c1, %c0_52, %c0_53] : memref<1x2x2x256xf32, #tpu.memory_space<vmem>>, vector<1x1x2x256xf32>
    %114 = vector.shape_cast %113 : vector<1x1x2x256xf32> to vector<2x256xf32>
    %115 = vector.shape_cast %112 : vector<2x256xf32> to vector<1x1x2x256xf32>
    tpu.vector_store %arg11[%c0_51, %c1, %c0_52, %c0_53], %115 {strides = array<i32>} : memref<1x2x2x256xf32, #tpu.memory_space<vmem>>, vector<1x1x2x256xf32>,
    return
  }
  func.func @transform_0(%arg0: i32) -> (i32, i32, i32) {
    %c0_i32 = arith.constant 0 : i32
    %c0_i32_0 = arith.constant 0 : i32
    %c0_i32_1 = arith.constant 0 : i32
    return %arg0, %c0_i32, %c0_i32_0 : i32, i32, i32
  }
  func.func @transform_1(%arg0: i32) -> (i32, i32, i32) {
    %c0_i32 = arith.constant 0 : i32
    %c0_i32_0 = arith.constant 0 : i32
    %c0_i32_1 = arith.constant 0 : i32
    return %arg0, %c0_i32, %c0_i32_0 : i32, i32, i32
  }
  func.func @transform_2(%arg0: i32) -> (i32, i32) {
    %c0_i32 = arith.constant 0 : i32
    %c0_i32_0 = arith.constant 0 : i32
    %c0_i32_1 = arith.constant 0 : i32
    return %c0_i32, %c0_i32_0 : i32, i32
  }
  func.func @transform_3(%arg0: i32) -> (i32, i32) {
    %c0_i32 = arith.constant 0 : i32
    %c0_i32_0 = arith.constant 0 : i32
    %c0_i32_1 = arith.constant 0 : i32
    return %c0_i32, %c0_i32_0 : i32, i32
  }
  func.func @transform_4(%arg0: i32) -> (i32, i32) {
    %c0_i32 = arith.constant 0 : i32
    %c0_i32_0 = arith.constant 0 : i32
    %c0_i32_1 = arith.constant 0 : i32
    return %c0_i32, %c0_i32_0 : i32, i32
  }
  func.func @transform_5(%arg0: i32) -> (i32, i32) {
    %c0_i32 = arith.constant 0 : i32
    %c0_i32_0 = arith.constant 0 : i32
    %c0_i32_1 = arith.constant 0 : i32
    return %c0_i32, %c0_i32_0 : i32, i32
  }
  func.func @transform_6(%arg0: i32) -> (i32, i32) {
    %c0_i32 = arith.constant 0 : i32
    %c0_i32_0 = arith.constant 0 : i32
    %c0_i32_1 = arith.constant 0 : i32
    return %c0_i32, %c0_i32_0 : i32, i32
  }
  func.func @transform_7(%arg0: i32) -> (i32, i32) {
    %c0_i32 = arith.constant 0 : i32
    %c0_i32_0 = arith.constant 0 : i32
    %c0_i32_1 = arith.constant 0 : i32
    return %c0_i32, %c0_i32_0 : i32, i32
  }
  func.func @transform_8(%arg0: i32) -> (i32, i32) {
    %c0_i32 = arith.constant 0 : i32
    %c0_i32_0 = arith.constant 0 : i32
    %c0_i32_1 = arith.constant 0 : i32
    return %c0_i32, %c0_i32_0 : i32, i32
  }
  func.func @transform_9(%arg0: i32) -> (i32, i32) {
    %c0_i32 = arith.constant 0 : i32
    %c0_i32_0 = arith.constant 0 : i32
    %c0_i32_1 = arith.constant 0 : i32
    return %c0_i32, %c0_i32_0 : i32, i32
  }
  func.func @transform_10(%arg0: i32) -> (i32, i32, i32, i32) {
    %c0_i32 = arith.constant 0 : i32
    %c0_i32_0 = arith.constant 0 : i32
    %c0_i32_1 = arith.constant 0 : i32
    %c0_i32_2 = arith.constant 0 : i32
    return %arg0, %c0_i32, %c0_i32_0, %c0_i32_1 : i32, i32, i32, i32
  }
}

</mosaic_0001>

<bundles_post_ra>
// kernel: squeeze.6
= control target key start
LH: loop header
LB: loop body
LE: loop exit
PB: predicated region body
PF: predicated region fallthrough
CT: control target
= control target key end

     0   :  { %s11_s10 = smov 3  ;;  %vm13_vm0 = vcmask 23552   ;;  %s23_s11 = smov 3  ;;  %vm20_vm1 = vcmask 72752   ;;  %vm27_vm2 = vcmask 48152   ;;  %s61_s0 = inlined_call_operand.vmem [shape: f32[2,1,3,3], index: 0, kind: input, shape index: {}]   ;;  %s62_s1 = inlined_call_operand.vmem [shape: f32[2,9], index: 1, kind: output, shape index: {}]  }
   0x1   :  { %v37_v0 = vld [vmem:[%s61_s0 + $0x4] sm:$0xf]  ;;  %v9_v1 = vld [vmem:[%s61_s0] sm:$0xf]  ;;  %s16_s0 = smov 3  ;;  %s40_s12 = smov 6  }
   0x2   :  { %8 = vst [vmem:[#allocation1 + $0x8] sm:$0xf] %v37_v0  ;;  %10 = vst [vmem:[#allocation1] sm:$0xf] %v9_v1  ;;  %s41_s13 = smov 3  }
   0x9   :  { %v17_v2 = vld [vmem:[#allocation1 + $0x2] ss:$8 sm:%s16_s0]   ;;  %v12_v3 = vld [vmem:[#allocation1] ss:$8 sm:%s11_s10]   ;;  %v24_v4 = vld [vmem:[#allocation1 + $0x1] ss:$8 sm:%s23_s11]  }
   0xa   :  { %18 = vrot.lane.b32.xlu0 %v17_v2, %s40_s12  ;;  %14 = vst.msk [vmem:[#allocation0] sm:$0x3] %vm13_vm0, %v12_v3  }
   0xe   :  { %25 = vrot.lane.b32.xlu0 %v24_v4, %s41_s13 }
  0x7c   :  { %v19_v5 = vpop.permute.xlu0 %18  }
  0x7d   :  { %21 = vst.msk [vmem:[#allocation0] sm:$0x3] %vm20_vm1, %v19_v5  }
  0x80   :  { %v26_v6 = vpop.permute.xlu0 %25  }
  0x81   :  { %28 = vst.msk [vmem:[#allocation0] sm:$0x3] %vm27_vm2, %v26_v6  }
  0x88   :  { %v33_v7 = vld [vmem:[#allocation0] sm:$0x3] }
  0x89   :  { %36 = vst [vmem:[%s62_s1] sm:$0x3] %v33_v7 }

// kernel: piha_forward.1
= control target key start
LH: loop header
LB: loop body
LE: loop exit
PB: predicated region body
PF: predicated region fallthrough
CT: control target
= control target key end

     0   :  { %s918_s13 = smov 0   ;;  %s1013_s0 = inlined_call_operand.vmem [shape: f32[2,36,256], index: 0, kind: input, shape index: {}]   ;;  %s1014_s1 = inlined_call_operand.vmem [shape: f32[2,18,256], index: 1, kind: input, shape index: {}]   ;;  %s1015_s2 = inlined_call_operand.vmem [shape: f32[8,36], index: 2, kind: input, shape index: {}]   ;;  %s1016_s3 = inlined_call_operand.vmem [shape: f32[8,1], index: 3, kind: input, shape index: {}]   ;;  %s1017_s4 = inlined_call_operand.vmem [shape: f32[4,2], index: 4, kind: input, shape index: {}]   ;;  %s1018_s5 = inlined_call_operand.vmem [shape: f32[4,2], index: 5, kind: input, shape index: {}]   ;;  %s1019_s6 = inlined_call_operand.vmem [shape: f32[4,18], index: 6, kind: input, shape index: {}]   ;;  %s1020_s7 = inlined_call_operand.vmem [shape: f32[4,1], index: 7, kind: input, shape index: {}]   ;;  %s1021_s8 = inlined_call_operand.vmem [shape: f32[2,1], index: 8, kind: input, shape index: {}]   ;;  %s1022_s9 = inlined_call_operand.vmem [shape: f32[2,1], index: 9, kind: input, shape index: {}]   ;;  %s1023_s10 = inlined_call_operand.vmem [shape: f32[2,2,2,256], index: 10, kind: output, shape index: {}]  }
   0x1 LB: > { %s795_s14 = sadd.s32 4294967295, %s858_s13   ;;  %p799_p0 = scmp.ge.s32.totalorder %s858_s13, 1  ;;  %s858_s13 = sphi %s918_s13, %s20_s13  }
   0x2   : > { %p322_p1 = scmp.lt.s32.totalorder %s858_s13, 3 }
   0x4   : > { %p323_p2 = pnand %p799_p0, %p322_p1 }
   0x5   : > { %p365_p3 = scmp.lt.s32.totalorder (!%p323_p2), %s795_s14, 1 }
   0x6   : > { %326 = sbr.rel (%p323_p2) target bundleno = 621 (0x26d), region = 60 }
   0xb   : > { %v860_v0 = vmov 0.0   ;;  %v391_v1 = vld [vmem:[%s1016_s3] sm:$0xff]  ;;  %s1025_s14 = smov (!%p365_p3, %s795_s14), 1  ;;  %v861_v2 = vmov 0   ;;  %vm401_vm0 = vcmask 1043456   ;;  %vm525_vm1 = vcmask 1041408  }
   0xc   : > { %596 = vmatprep.mubr.f32.mxu1 %v860_v0  ;;  %472 = vmatprep.mubr.f32.mxu0 %v860_v0  ;;  %s817_s17 = smul.u32 80, %s1025_s14  ;;  %v515_v3 = vld [vmem:[%s1020_s7] sm:$0xf]  ;;  %vm521_vm2 = vcmask 146432   ;;  %vm397_vm3 = vcmask 293888   ;;  %vm487_vm6 = vcmask 11264  }
   0xd   : > { %830 = vset.pattern.permute.xlu0 %v861_v2  ;;  %831 = vset.pattern.permute.xlu1 %v861_v2  ;;  %s818_s20 = smul.u32 48, %s1025_s14  ;;  %v508_v18 = vld [vmem:[%s1019_s6] sm:$0xf]  ;;  %vm636_vm7 = vcmask 1024   ;;  %s816_s21 = sshll.u32 %s1025_s14, 3 }
   0xe   : > { %394 = vperm.xlu0 %830, %v391_v1   ;;  %s941_s23 = scalar_lea.vmem %s1013_s0, %s817_s17  ;;  %v380_v21 = vld [vmem:[%s1015_s2] sm:$0xff]  ;;  %s379_s24 = scalar_lea.vmem %s1023_s10, %s816_s21 }
   0xf   : > { %v390_v4 = vld [vmem:[%s941_s23 + $0x48] sm:$0xf]  ;;  %v389_v5 = vld [vmem:[%s941_s23 + $0x40] sm:$0xf]  ;;  %v388_v6 = vld [vmem:[%s941_s23 + $0x38] sm:$0xff]  ;;  %s374_s26 = scalar_lea.vmem %s1014_s1, %s818_s20 }
  0x10   : > { %804 = vmatprep.subr.msk.mxu0 %vm401_vm0, %v390_v4  ;;  %v514_v7 = vld [vmem:[%s374_s26 + $0x28] sm:$0x3]  ;;  %v387_v8 = vld [vmem:[%s941_s23 + $0x30] sm:$0xff]  ;;  %v513_v9 = vld [vmem:[%s374_s26 + $0x20] sm:$0x3] }
  0x11   : > { %805 = vmatpush1.msk.msra.mxu0 %vm401_vm0, %v389_v5  ;;  %807 = vmatprep.subr.msk.mxu1 %vm525_vm1, %v514_v7  ;;  %v386_v10 = vld [vmem:[%s941_s23 + $0x28] sm:$0xff]  ;;  %v512_v11 = vld [vmem:[%s374_s26 + $0x18] sm:$0xff]  ;;  %v385_v12 = vld [vmem:[%s941_s23 + $0x20] sm:$0xff] }
  0x12   : > { %518 = vperm.xlu0 %830, %v515_v3   ;;  %432 = vmatprep.subr.mxu0 %v388_v6  ;;  %v511_v13 = vld [vmem:[%s374_s26 + $0x10] sm:$0xff]  ;;  %v510_v14 = vld [vmem:[%s374_s26 + $0x8] sm:$0xff]  ;;  %v384_v15 = vld [vmem:[%s941_s23 + $0x18] sm:$0xff] }
  0x13   : > { %808 = vmatpush1.msk.msra.mxu1 %vm525_vm1, %v513_v9  ;;  %433 = vmatpush1.msra.mxu0 %v387_v8  ;;  %v509_v16 = vld [vmem:[%s374_s26] sm:$0xff]  ;;  %v383_v17 = vld [vmem:[%s941_s23 + $0x10] sm:$0xff]  ;;  %v382_v19 = vld [vmem:[%s941_s23 + $0x8] sm:$0xff] }
  0x14   : > { %560 = vmatprep.subr.mxu1 %v512_v11  ;;  %434 = vmatprep.subr.mxu0 %v386_v10  ;;  %v381_v20 = vld [vmem:[%s941_s23] sm:$0xff] }
  0x15   : > { %561 = vmatpush1.msra.mxu1 %v511_v13  ;;  %435 = vmatpush1.msra.mxu0 %v385_v12  ;;  %v485_v51 = vld [vmem:[%s1017_s4] sm:$0xf] }
  0x16   : > { %562 = vmatprep.subr.mxu1 %v510_v14  ;;  %436 = vmatprep.subr.mxu0 %v384_v15  ;;  %v634_v5 = vld [vmem:[%s1021_s8] sm:$0x3] }
  0x17   : > { %563 = vmatpush1.msra.mxu1 %v509_v16  ;;  %437 = vmatpush1.msra.mxu0 %v383_v17 }
  0x18   : > { %809 = vmatmul.mubr.msk.f32.vlgmr.msra.gmra.mxu1 %vm521_vm2, %v508_v18  ;;  %438 = vmatprep.subr.mxu0 %v382_v19 }
  0x19   : > { %439 = vmatpush1.msra.mxu0 %v381_v20 }
  0x1a   : > { %806 = vmatmul.mubr.msk.f32.vlgmr.msra.gmra.mxu0 %vm397_vm3, %v380_v21 }
  0x89   : > { %v395_v22 = vpop.permute.xlu0 %394 }
  0x8d   : > { %v519_v24 = vpop.permute.xlu0 %518 }
  0xd8   : > { %v598_v23 = vpop.f32.mrf.mxu1 }
  0xd9   : > { %v599_v29 = vadd.f32 %v598_v23, %v519_v24 }
  0xda   : > { %v474_v25 = vpop.f32.mrf.mxu0  ;;  %v600_v27 = vpop.f32.mrf.mxu1 }
  0xdb   : > { %v964_v26 = vadd.f32 %v474_v25, %v395_v22  ;;  %v601_v32 = vadd.f32 %v600_v27, %v519_v24  ;;  %v645_v24 = vld [vmem:[%s1022_s9] sm:$0x3] }
  0xdc   : > { %v476_v28 = vpop.f32.mrf.mxu0 }
  0xdd   : > { %v605_v30 = vrot.slane %v964_v26, 4  ;;  %v967_v31 = vadd.f32 %v476_v28, %v395_v22  ;;  %v479_v35 = vsel %vm401_vm0, %v964_v26, 0.0 }
  0xdf   : > { %v969_v33 = vmul.f32 %v605_v30, %v599_v29  ;;  %v606_v34 = vrot.slane %v967_v31, 4  ;;  %v480_v36 = vsel %vm401_vm0, %v967_v31, 0.0 }
  0xe0   : > { %v481_v37 = vadd.f32 %v480_v36, %v479_v35 }
  0xe1   : > { %v976_v38 = vmul.f32 %v606_v34, %v601_v32  ;;  %v611_v39 = vand.u32 2147483647, %v969_v33 }
  0xe2   : > { %482 = vadd.xlane.f32.xlu0 %v481_v37 }
  0xe3   : > { %v612_v40 = vand.u32 2147483647, %v976_v38  ;;  %vm613_vm4 = vcmp.gt.f32.partialorder %v611_v39, 0.05 }
  0xe4   : > { %v810_v41 = vsel %vm613_vm4, 1.0, %v860_v0 }
  0xe5   : > { %vm614_vm5 = vcmp.gt.f32.partialorder %v612_v40, 0.05  ;;  %v626_v44 = vsel %vm401_vm0, %v810_v41, 0.0  ;;  %v619_v46 = vmul.f32 %v810_v41, %v969_v33 }
  0xe6   : > { %v811_v42 = vsel %vm614_vm5, 1.0, %v860_v0  ;;  %v496_v0 = vld [vmem:[%s1018_s5] sm:$0xf] }
  0xe7   : > { %v620_v43 = vmul.f32 %v811_v42, %v976_v38  ;;  %v627_v45 = vsel %vm401_vm0, %v811_v42, 0.0  ;;  %v621_v49 = vsel %vm401_vm0, %v619_v46, 0.0 }
  0xe8   : > { %v628_v47 = vadd.f32 %v627_v45, %v626_v44 }
  0xe9   : > { %v622_v48 = vsel %vm401_vm0, %v620_v43, 0.0 }
  0xea   : > { %629 = vadd.xlane.f32.xlu1 %v628_v47  ;;  %v623_v50 = vadd.f32 %v622_v48, %v621_v49 }
  0xee   : > { %624 = vadd.xlane.f32.xlu1 %v623_v50 }
 0x16b   : > { %v483_v52 = vpop.xlane.xlu0 %482 }
 0x16c   : > { %v484_v53 = vmul.f32 0.00390625, %v483_v52 }
 0x16e   : > { %v486_v54 = vmul.f32 %v485_v51, %v484_v53 }
 0x170   : > { %v488_v55 = vsel %vm487_vm6, %v486_v54, 0.0 }
 0x171   : > { %v489_v56 = vrot.slane %v488_v55, 4 }
 0x173   : > { %v630_v57 = vpop.xlane.xlu1 %629  ;;  %v490_v58 = vadd.f32 %v489_v56, %v488_v55 }
 0x174   : > { %v631_v59 = vadd.f32 1e-06, %v630_v57 }
 0x175   : > { %v491_v60 = vrot.slane %v490_v58, 2 }
 0x176   : > { %832 = vrcp.f32 %v631_v59 }
 0x177   : > { %v492_v61 = vadd.f32 %v491_v60, %v490_v58  ;;  %v625_v6 = vpop.xlane.xlu1 %624  ;;  %v862_v60 = vmov 1983009808  }
 0x179   : > { %v493_v62 = vrot.slane %v492_v61, 1 }
 0x17b   : > { %v494_v63 = vadd.f32 %v493_v62, %v492_v61  ;;  %v718_v61 = vunpack.c.l.s4 %v862_v60  ;;  %v720_v62 = vlaneseq }
 0x17d   : > { %v495_v1 = vmax.f32 %v494_v63, 0.0 }
 0x17f   : > { %v497_v2 = vmul.f32 %v496_v0, %v495_v1  ;;  %v719_v0 = vunpack.c.0.s8 %v718_v61  ;;  %v721_v1 = vshrl.u32 %v720_v62, 7 }
 0x181   : > { %v498_v3 = vsel %vm487_vm6, %v497_v2, 0.0 }
 0x182   : > { %499 = vadd.xlane.f32.xlu1 %v498_v3 }
 0x183   : > { %v833_v4 = vpop.eup %832 }
 0x184   : > { %v633_v7 = vmul.f32 %v833_v4, %v625_v6 }
 0x186   : > { %v635_v8 = vmul.f32 %v634_v5, %v633_v7  ;;  %v654_v9 = vrot.slane %v633_v7, 2 }
 0x188   : > { %v637_v10 = vsel %vm636_vm7, %v635_v8, 0.0  ;;  %v656_v11 = vmul.f32 %v654_v9, %v634_v5  ;;  %v722_v8 = vsub.s32 %v719_v0, %v721_v1 }
 0x189   : > { %v638_v12 = vrot.slane %v637_v10, 4 }
 0x18a   : > { %v657_v13 = vsel %vm636_vm7, %v656_v11, 0.0 }
 0x18b   : > { %v639_v14 = vadd.f32 %v638_v12, %v637_v10  ;;  %v658_v15 = vrot.slane %v657_v13, 4 }
 0x18d   : > { %v640_v16 = vrot.slane %v639_v14, 2  ;;  %v659_v17 = vadd.f32 %v658_v15, %v657_v13 }
 0x18f   : > { %v641_v18 = vadd.f32 %v640_v16, %v639_v14  ;;  %v660_v19 = vrot.slane %v659_v17, 2 }
 0x191   : > { %v642_v20 = vrot.slane %v641_v18, 1  ;;  %v661_v21 = vadd.f32 %v660_v19, %v659_v17 }
 0x193   : > { %v643_v22 = vadd.f32 %v642_v20, %v641_v18  ;;  %v662_v23 = vrot.slane %v661_v21, 1 }
 0x195   : > { %v644_v25 = vmax.f32 %v643_v22, 0.0  ;;  %v663_v27 = vadd.f32 %v662_v23, %v661_v21 }
 0x197   : > { %v646_v28 = vmul.f32 %v645_v24, %v644_v25  ;;  %v664_v29 = vmax.f32 %v663_v27, 0.0 }
 0x199   : > { %v648_v30 = vsub.f32 0.0, %v646_v28  ;;  %v665_v32 = vmul.f32 %v664_v29, %v645_v24 }
 0x19b   : > { %v649_v34 = vmul.f32 1.442695, %v648_v30  ;;  %v667_v35 = vsub.f32 0.0, %v665_v32 }
 0x19d   : > { %834 = vpow2.f32 %v649_v34  ;;  %v668_v36 = vmul.f32 1.442695, %v667_v35 }
 0x19f   : > { %836 = vpow2.f32 %v668_v36 }
 0x1aa   : > { %v835_v37 = vpop.eup %834 }
 0x1ab   : > { %v651_v39 = vadd.f32 1.0, %v835_v37 }
 0x1ac   : > { %v837_v40 = vpop.eup %836 }
 0x1ad   : > { %v670_v41 = vadd.f32 1.0, %v837_v40  ;;  %838 = vrcp.f32 %v651_v39 }
 0x1af   : > { %840 = vrcp.f32 %v670_v41 }
 0x1ba   : > { %v839_v42 = vpop.eup %838 }
 0x1bc   : > { %v841_v43 = vpop.eup %840 }
 0x1bd   : > { %v672_v44 = vmax.f32 %v839_v42, %v841_v43 }
 0x1bf   : > { %v673_v45 = vsub.f32 %v839_v42, %v672_v44  ;;  %v676_v46 = vsub.f32 %v841_v43, %v672_v44 }
 0x1c1   : > { %v674_v47 = vmul.f32 1.442695, %v673_v45  ;;  %v677_v48 = vmul.f32 1.442695, %v676_v46 }
 0x1c3   : > { %842 = vpow2.f32 %v674_v47 }
 0x1c4   : > { %844 = vpow2.f32 %v677_v48 }
 0x1d0   : > { %v843_v49 = vpop.eup %842 }
 0x1d1   : > { %v845_v50 = vpop.eup %844 }
 0x1d2   : > { %v679_v51 = vadd.f32 %v845_v50, %v843_v49 }
 0x1d4   : > { %846 = vrcp.f32 %v679_v51 }
 0x1e1   : > { %v847_v52 = vpop.eup %846 }
 0x1e2   : > { %v703_v53 = vmul.f32 %v847_v52, %v845_v50  ;;  %v681_v54 = vmul.f32 %v847_v52, %v843_v49 }
 0x1e4   : > { %706 = vperm.xlu1 %831, %v703_v53  }
 0x1e8   : > { %684 = vperm.xlu1 %831, %v681_v54  }
 0x20b   : > { %v500_v55 = vpop.xlane.xlu1 %499 }
 0x20c   : > { %v501_v56 = vsub.f32 0.0, %v500_v55 }
 0x20e   : > { %v502_v57 = vmul.f32 1.442695, %v501_v56 }
 0x210   : > { %848 = vpow2.f32 %v502_v57 }
 0x21d   : > { %v849_v58 = vpop.eup %848 }
 0x21e   : > { %v504_v59 = vadd.f32 1.0, %v849_v58 }
 0x220   : > { %850 = vrcp.f32 %v504_v59 }
 0x22d   : > { %v851_v63 = vpop.eup %850 }
 0x22e   : > { %v506_v4 = vmul.f32 %v851_v63, %v964_v26  ;;  %v507_v5 = vmul.f32 %v851_v63, %v967_v31 }
 0x25f   : > { %v707_v2 = vpop.permute.xlu1 %706 }
 0x260   : > { %v708_v3 = vrot.slane %v707_v2, 6 }
 0x262   : > { %v710_v6 = vmul.f32 %v708_v3, %v969_v33  ;;  %v711_v7 = vmul.f32 %v708_v3, %v976_v38 }
 0x263   : > { %v685_v9 = vpop.permute.xlu1 %684 }
 0x264   : > { %v712_v10 = vadd.f32 %v710_v6, %v506_v4  ;;  %v713_v11 = vadd.f32 %v711_v7, %v507_v5  ;;  %v687_v12 = vmul.f32 %v685_v9, %v969_v33  ;;  %v688_v13 = vmul.f32 %v685_v9, %v976_v38 }
 0x266   : > { %v716_v14 = vcombine.low %v712_v10, %v713_v11  ;;  %v689_v15 = vadd.f32 %v687_v12, %v506_v4  ;;  %v690_v16 = vadd.f32 %v688_v13, %v507_v5 }
 0x268   : > { %v723_v26 = vrot.slane %v716_v14, %v722_v8  ;;  %v693_v31 = vcombine.low %v689_v15, %v690_v16 }
 0x26a   : > { %v724_v17 = vcombine.high %v723_v26, %v723_v26  ;;  %812 = vst.sshfl [vmem:[%s379_s24] sm:$0x33 pattern:$0x76325410] %v693_v31 }
 0x26c   : > { %813 = vst [vmem:[%s379_s24 + $0x4] sm:$0xf] %v724_v17 }
 0x26d PF: > { %s20_s13 = sadd.s32 1, %s858_s13  }
 0x26e   : > { %p17_p4 = scmp.ge.s32.totalorder %s20_s13, 4  }
 0x270   :  { %19 = sbr.rel (!%p17_p4) target bundleno = 1 (0x1), region = 94 }

</bundles_post_ra>
